<compile_context>
chip_gen: v7x
topology: tpu7x:2x2x1
jax: 0.10.0
libtpu: 0.0.40
codegen_flags: <defaults>
</compile_context>

<pallas_src>
import functools

import jax
import jax.numpy as jnp
from jax.experimental import pallas as pl
from jax.experimental.pallas import tpu as pltpu

INPUT_CHANNELS = 4
CONV_NUM_FILTERS = 1
CONV_FILTER_WIDTH = 3
OUTPUT_UNITS = 2

LANE = 128


def _round_up(a, m):
    return ((a + m - 1) // m) * m


def model_kernel(wconv_ref, bconv_ref, wfc_ref, bfc_ref, x_ref, out_ref, *, valid_len):
    """One batch tile.

    wconv_ref: (C, K)             f32 SMEM   conv weight (single output filter)
    bconv_ref: (1, 1)             f32 SMEM   conv bias
    wfc_ref:   (1, OUTPUT_UNITS)  f32 VMEM   fc weight (transposed)
    bfc_ref:   (1, OUTPUT_UNITS)  f32 VMEM   fc bias
    x_ref:     (TB, C*L)          f32 VMEM   one row = [chan0 | chan1 | chan2 | chan3]
    out_ref:   (TB, OUTPUT_UNITS) f32 VMEM
    """
    tb, cl = x_ref.shape
    L = cl // INPUT_CHANNELS
    K = CONV_FILTER_WIDTH

    # Hoist the C*K SMEM scalar reads out of the MAC chain.
    w = [[wconv_ref[c, k] for k in range(K)] for c in range(INPUT_CHANNELS)]

    # Per-tap channel sums on dense (TB, L) lane slabs (VPU scalar*vector MACs).
    # tap 0 uses x[l-1], tap 1 uses x[l], tap 2 uses x[l+1].
    x0 = x_ref[:, 0:L]
    s_prev = w[0][0] * x0
    s_mid = w[0][1] * x0
    s_next = w[0][2] * x0
    for c in range(1, INPUT_CHANNELS):
        xc = x_ref[:, c * L:(c + 1) * L]
        s_prev = s_prev + w[c][0] * xc
        s_mid = s_mid + w[c][1] * xc
        s_next = s_next + w[c][2] * xc

    # Align the outer taps with XLU rotations; kill the wrap-around lanes with
    # cheap (1, L) 0/1 masks (matches Conv1d's zero padding).
    lane = jax.lax.broadcasted_iota(jnp.int32, (1, L), 1)
    not_first = (lane > 0).astype(jnp.float32)
    not_last = (lane < valid_len - 1).astype(jnp.float32)
    conv = (s_mid
            + not_first * pltpu.roll(s_prev, shift=1, axis=1)
            + not_last * pltpu.roll(s_next, shift=L - 1, axis=1))

    # If the length axis was padded up to a lane multiple, drop padded lanes
    # from the global max.
    if valid_len < L:
        conv = jnp.where(lane < valid_len, conv, -jnp.inf)

    # AdaptiveMaxPool1d(1): global max over the length (lane) axis.
    m = jnp.max(conv, axis=1, keepdims=True)              # (TB, 1)
    # Conv bias + ReLU commute with the max (uniform bias, monotone ReLU,
    # single output filter) -> apply only to the (TB, 1) maxima.
    m = jnp.maximum(m + bconv_ref[0, 0], 0.0)

    # Linear(1 -> 2): (TB, 1) * (1, 2) + (1, 2) -> (TB, 2).
    out_ref[...] = m * wfc_ref[...] + bfc_ref[...]


def torch_model_forward(x, wconv, bconv, wfc, bfc, *, batch_block=1024,
                        vmem_block_budget_bytes=36 * 1024 * 1024):
    """x: (B, C, L) float32.  Returns (B, OUTPUT_UNITS) float32."""
    assert x.ndim == 3
    B, C, L = x.shape
    assert C == INPUT_CHANNELS
    assert CONV_NUM_FILTERS == 1  # bias/ReLU-after-max trick relies on this

    x = x.astype(jnp.float32)
    valid_len = L
    if L % LANE != 0:
        # Fallback for unaligned lengths: pad the length axis (one extra HBM
        # copy); the padded lanes are masked out of the max in-kernel.
        L = _round_up(L, LANE)
        x = jnp.pad(x, ((0, 0), (0, 0), (0, L - valid_len)))

    # Free, contiguous reshape (no HBM relayout): channel c of batch row b now
    # occupies lanes [c*L, (c+1)*L) of row b.
    x2 = x.reshape(B, C * L)

    wconv2 = wconv.reshape(INPUT_CHANNELS, CONV_FILTER_WIDTH).astype(jnp.float32)
    bconv2 = bconv.reshape(1, 1).astype(jnp.float32)
    wfc_t = wfc.reshape(OUTPUT_UNITS, CONV_NUM_FILTERS).T.astype(jnp.float32)  # (1, 2)
    bfc2 = bfc.reshape(1, OUTPUT_UNITS).astype(jnp.float32)

    # ---- batch tile selection -------------------------------------------------
    batch_block = max(8, (batch_block // 8) * 8)
    if B <= 8:
        tb = B                                    # single tile, full batch dim
    else:
        # Guarantee >= 2 grid steps so ("parallel",) can shard the batch axis
        # across both TensorCores on dual-TC chips (v7x); keep tb a multiple of 8.
        tb = min(batch_block, _round_up(pl.cdiv(B, 2), 8))

        # Conservative VMEM budget (v7x: 64 MiB/TC): per step there are two
        # double-buffered (tb, C*L) input blocks plus ~6 (tb, L) f32 temporaries.
        def est(t):
            return 2 * t * C * L * 4 + 6 * t * L * 4

        while tb > 8 and est(tb) > vmem_block_budget_bytes:
            tb = max(8, ((tb // 2) // 8) * 8)

    grid = (pl.cdiv(B, tb),)
    kernel = functools.partial(model_kernel, valid_len=valid_len)

    return pl.pallas_call(
        kernel,
        out_shape=jax.ShapeDtypeStruct((B, OUTPUT_UNITS), jnp.float32),
        grid=grid,
        in_specs=[
            pl.BlockSpec(memory_space=pltpu.MemorySpace.SMEM),        # wconv (C, K)
            pl.BlockSpec(memory_space=pltpu.MemorySpace.SMEM),        # bconv (1, 1)
            pl.BlockSpec(memory_space=pltpu.MemorySpace.VMEM),        # wfc   (1, 2)
            pl.BlockSpec(memory_space=pltpu.MemorySpace.VMEM),        # bfc   (1, 2)
            pl.BlockSpec((tb, C * L), lambda b: (b, 0)),              # x block
        ],
        out_specs=pl.BlockSpec((tb, OUTPUT_UNITS), lambda b: (b, 0)),
        compiler_params=pltpu.CompilerParams(
            dimension_semantics=("parallel",),
            vmem_limit_bytes=48 * 1024 * 1024,
        ),
    )(wconv2, bconv2, wfc_t, bfc2, x2)


def reference_forward(x, wconv, bconv, wfc, bfc):
    """Pure-JAX reference mirroring the PyTorch forward."""
    B, C, L = x.shape
    pad = CONV_FILTER_WIDTH // 2
    xp = jnp.pad(x, ((0, 0), (0, 0), (pad, pad)))
    w = wconv.reshape(C, CONV_FILTER_WIDTH)
    conv = jnp.zeros((B, L), jnp.float32)
    for c in range(C):
        for k in range(CONV_FILTER_WIDTH):
            conv = conv + w[c, k] * xp[:, c, k:k + L]
    conv = conv + bconv[0]
    conv = jnp.maximum(conv, 0.0)
    m = jnp.max(conv, axis=-1, keepdims=True)   # (B, 1)
    return m @ wfc.T + bfc[None, :]


if __name__ == "__main__":
    key = jax.random.PRNGKey(0)
    k_x, k_wc, k_bc, k_wf, k_bf = jax.random.split(key, 5)

    # Deterministic synthetic parameters (shapes match the PyTorch module).
    wconv = 0.5 * jax.random.normal(
        k_wc, (CONV_NUM_FILTERS, INPUT_CHANNELS, CONV_FILTER_WIDTH), dtype=jnp.float32)
    bconv = 0.1 * jax.random.normal(k_bc, (CONV_NUM_FILTERS,), dtype=jnp.float32)
    wfc = 0.5 * jax.random.normal(
        k_wf, (OUTPUT_UNITS, CONV_NUM_FILTERS), dtype=jnp.float32)
    bfc = 0.1 * jax.random.normal(k_bf, (OUTPUT_UNITS,), dtype=jnp.float32)

    # Primary small test (lane-aligned fast path, single block): B=2, C=4, L=128.
    B, L = 2, 128
    x = jax.random.normal(k_x, (B, INPUT_CHANNELS, L), dtype=jnp.float32)
    out = jax.block_until_ready(torch_model_forward(x, wconv, bconv, wfc, bfc))
    ref = reference_forward(x, wconv, bconv, wfc, bfc)
    assert out.shape == (B, OUTPUT_UNITS)
    assert jnp.allclose(out, ref, atol=1e-5, rtol=1e-5)

    # Multi-block pipelined path (grid > 1) with a partial last batch tile.
    B2, L2 = 24, 256
    x2 = jax.random.normal(jax.random.PRNGKey(1), (B2, INPUT_CHANNELS, L2),
                           dtype=jnp.float32)
    out2 = jax.block_until_ready(torch_model_forward(x2, wconv, bconv, wfc, bfc))
    ref2 = reference_forward(x2, wconv, bconv, wfc, bfc)
    assert out2.shape == (B2, OUTPUT_UNITS)
    assert jnp.allclose(out2, ref2, atol=1e-5, rtol=1e-5)

    # Unaligned-length fallback path (L % 128 != 0).
    B3, L3 = 16, 100
    x3 = jax.random.normal(jax.random.PRNGKey(2), (B3, INPUT_CHANNELS, L3),
                           dtype=jnp.float32)
    out3 = jax.block_until_ready(torch_model_forward(x3, wconv, bconv, wfc, bfc))
    ref3 = reference_forward(x3, wconv, bconv, wfc, bfc)
    assert jnp.allclose(out3, ref3, atol=1e-5, rtol=1e-5)

    print("KERNEL_OK")
</pallas_src>

<mosaic_0001>
module attributes {stable_mosaic.version = 11 : i64} {
  func.func @model_kernel(%arg0: i32, %arg1: memref<4x3xf32, #tpu.memory_space<smem>>, %arg2: memref<1x1xf32, #tpu.memory_space<smem>>, %arg3: memref<1x2xf32, #tpu.memory_space<vmem>>, %arg4: memref<1x2xf32, #tpu.memory_space<vmem>>, %arg5: memref<2x512xf32, #tpu.memory_space<vmem>>, %arg6: memref<2x2xf32, #tpu.memory_space<vmem>>) attributes {dimension_semantics = [#tpu.dimension_semantics<parallel>], iteration_bounds = array<i64: 1>, scalar_prefetch = 0 : i64, scratch_operands = 0 : i64, tpu.core_type = #tpu.core_type<tc>, window_params = [{transform_indices = @transform_0, window_bounds = array<i64: 4, 3>}, {transform_indices = @transform_1, window_bounds = array<i64: 1, 1>}, {pipeline_mode = #tpu.pipeline_mode<synchronous>, transform_indices = @transform_2, window_bounds = array<i64: 1, 2>}, {pipeline_mode = #tpu.pipeline_mode<synchronous>, transform_indices = @transform_3, window_bounds = array<i64: 1, 2>}, {transform_indices = @transform_4, window_bounds = array<i64: 2, 512>}, {transform_indices = @transform_5, window_bounds = array<i64: 2, 2>}]} {
    %c0 = arith.constant 0 : index
    %c0_0 = arith.constant 0 : index
    %0 = memref.load %arg1[%c0, %c0_0] : memref<4x3xf32, #tpu.memory_space<smem>>
    %c0_1 = arith.constant 0 : index
    %c1 = arith.constant 1 : index
    %1 = memref.load %arg1[%c0_1, %c1] : memref<4x3xf32, #tpu.memory_space<smem>>
    %c0_2 = arith.constant 0 : index
    %c2 = arith.constant 2 : index
    %2 = memref.load %arg1[%c0_2, %c2] : memref<4x3xf32, #tpu.memory_space<smem>>
    %c1_3 = arith.constant 1 : index
    %c0_4 = arith.constant 0 : index
    %3 = memref.load %arg1[%c1_3, %c0_4] : memref<4x3xf32, #tpu.memory_space<smem>>
    %c1_5 = arith.constant 1 : index
    %c1_6 = arith.constant 1 : index
    %4 = memref.load %arg1[%c1_5, %c1_6] : memref<4x3xf32, #tpu.memory_space<smem>>
    %c1_7 = arith.constant 1 : index
    %c2_8 = arith.constant 2 : index
    %5 = memref.load %arg1[%c1_7, %c2_8] : memref<4x3xf32, #tpu.memory_space<smem>>
    %c2_9 = arith.constant 2 : index
    %c0_10 = arith.constant 0 : index
    %6 = memref.load %arg1[%c2_9, %c0_10] : memref<4x3xf32, #tpu.memory_space<smem>>
    %c2_11 = arith.constant 2 : index
    %c1_12 = arith.constant 1 : index
    %7 = memref.load %arg1[%c2_11, %c1_12] : memref<4x3xf32, #tpu.memory_space<smem>>
    %c2_13 = arith.constant 2 : index
    %c2_14 = arith.constant 2 : index
    %8 = memref.load %arg1[%c2_13, %c2_14] : memref<4x3xf32, #tpu.memory_space<smem>>
    %c3 = arith.constant 3 : index
    %c0_15 = arith.constant 0 : index
    %9 = memref.load %arg1[%c3, %c0_15] : memref<4x3xf32, #tpu.memory_space<smem>>
    %c3_16 = arith.constant 3 : index
    %c1_17 = arith.constant 1 : index
    %10 = memref.load %arg1[%c3_16, %c1_17] : memref<4x3xf32, #tpu.memory_space<smem>>
    %c3_18 = arith.constant 3 : index
    %c2_19 = arith.constant 2 : index
    %11 = memref.load %arg1[%c3_18, %c2_19] : memref<4x3xf32, #tpu.memory_space<smem>>
    %c0_20 = arith.constant 0 : index
    %c0_21 = arith.constant 0 : index
    %12 = vector.load %arg5[%c0_20, %c0_21] : memref<2x512xf32, #tpu.memory_space<vmem>>, vector<2x128xf32>
    %13 = vector.broadcast %0 : f32 to vector<2x128xf32>
    %14 = arith.mulf %13, %12 : vector<2x128xf32>
    %15 = vector.broadcast %1 : f32 to vector<2x128xf32>
    %16 = arith.mulf %15, %12 : vector<2x128xf32>
    %17 = vector.broadcast %2 : f32 to vector<2x128xf32>
    %18 = arith.mulf %17, %12 : vector<2x128xf32>
    %c0_22 = arith.constant 0 : index
    %c128 = arith.constant 128 : index
    %19 = vector.load %arg5[%c0_22, %c128] : memref<2x512xf32, #tpu.memory_space<vmem>>, vector<2x128xf32>
    %20 = vector.broadcast %3 : f32 to vector<2x128xf32>
    %21 = arith.mulf %20, %19 : vector<2x128xf32>
    %22 = arith.addf %14, %21 : vector<2x128xf32>
    %23 = vector.broadcast %4 : f32 to vector<2x128xf32>
    %24 = arith.mulf %23, %19 : vector<2x128xf32>
    %25 = arith.addf %16, %24 : vector<2x128xf32>
    %26 = vector.broadcast %5 : f32 to vector<2x128xf32>
    %27 = arith.mulf %26, %19 : vector<2x128xf32>
    %28 = arith.addf %18, %27 : vector<2x128xf32>
    %c0_23 = arith.constant 0 : index
    %c256 = arith.constant 256 : index
    %29 = vector.load %arg5[%c0_23, %c256] : memref<2x512xf32, #tpu.memory_space<vmem>>, vector<2x128xf32>
    %30 = vector.broadcast %6 : f32 to vector<2x128xf32>
    %31 = arith.mulf %30, %29 : vector<2x128xf32>
    %32 = arith.addf %22, %31 : vector<2x128xf32>
    %33 = vector.broadcast %7 : f32 to vector<2x128xf32>
    %34 = arith.mulf %33, %29 : vector<2x128xf32>
    %35 = arith.addf %25, %34 : vector<2x128xf32>
    %36 = vector.broadcast %8 : f32 to vector<2x128xf32>
    %37 = arith.mulf %36, %29 : vector<2x128xf32>
    %38 = arith.addf %28, %37 : vector<2x128xf32>
    %c0_24 = arith.constant 0 : index
    %c384 = arith.constant 384 : index
    %39 = vector.load %arg5[%c0_24, %c384] : memref<2x512xf32, #tpu.memory_space<vmem>>, vector<2x128xf32>
    %40 = vector.broadcast %9 : f32 to vector<2x128xf32>
    %41 = arith.mulf %40, %39 : vector<2x128xf32>
    %42 = arith.addf %32, %41 : vector<2x128xf32>
    %43 = vector.broadcast %10 : f32 to vector<2x128xf32>
    %44 = arith.mulf %43, %39 : vector<2x128xf32>
    %45 = arith.addf %35, %44 : vector<2x128xf32>
    %46 = vector.broadcast %11 : f32 to vector<2x128xf32>
    %47 = arith.mulf %46, %39 : vector<2x128xf32>
    %48 = arith.addf %38, %47 : vector<2x128xf32>
    %49 = tpu.iota {dimensions = array<i32: 1>} : vector<1x128xi32>
    %c0_i32 = arith.constant 0 : i32
    %50 = vector.broadcast %c0_i32 : i32 to vector<1x128xi32>
    %51 = arith.cmpi sgt, %49, %50 : vector<1x128xi32>
    %52 = arith.extui %51 : vector<1x128xi1> to vector<1x128xi32>
    %53 = arith.sitofp %52 : vector<1x128xi32> to vector<1x128xf32>
    %c127_i32 = arith.constant 127 : i32
    %54 = vector.broadcast %c127_i32 : i32 to vector<1x128xi32>
    %55 = arith.cmpi slt, %49, %54 : vector<1x128xi32>
    %56 = arith.extui %55 : vector<1x128xi1> to vector<1x128xi32>
    %57 = arith.sitofp %56 : vector<1x128xi32> to vector<1x128xf32>
    %c1_i32 = arith.constant 1 : i32
    %58 = tpu.dynamic_rotate %42 by %c1_i32 dim 1 : vector<2x128xf32>, i32 -> vector<2x128xf32>
    %59 = vector.broadcast %53 : vector<1x128xf32> to vector<2x128xf32>
    %60 = arith.mulf %59, %58 : vector<2x128xf32>
    %61 = arith.addf %45, %60 : vector<2x128xf32>
    %c127_i32_25 = arith.constant 127 : i32
    %62 = tpu.dynamic_rotate %48 by %c127_i32_25 dim 1 : vector<2x128xf32>, i32 -> vector<2x128xf32>
    %63 = vector.broadcast %57 : vector<1x128xf32> to vector<2x128xf32>
    %64 = arith.mulf %63, %62 : vector<2x128xf32>
    %65 = arith.addf %61, %64 : vector<2x128xf32>
    %cst = arith.constant dense<0xFF800000> : vector<2xf32>
    %66 = vector.multi_reduction <maximumf>, %65, %cst [1] : vector<2x128xf32> to vector<2xf32>
    %67 = vector.shape_cast %66 : vector<2xf32> to vector<2x1xf32>
    %c0_26 = arith.constant 0 : index
    %c0_27 = arith.constant 0 : index
    %68 = memref.load %arg2[%c0_26, %c0_27] : memref<1x1xf32, #tpu.memory_space<smem>>
    %69 = vector.broadcast %68 : f32 to vector<2x1xf32>
    %70 = arith.addf %67, %69 : vector<2x1xf32>
    %cst_28 = arith.constant 0.000000e+00 : f32
    %71 = vector.broadcast %cst_28 : f32 to vector<2x1xf32>
    %72 = arith.maximumf %70, %71 : vector<2x1xf32>
    %c0_29 = arith.constant 0 : index
    %c0_30 = arith.constant 0 : index
    %73 = vector.load %arg3[%c0_29, %c0_30] : memref<1x2xf32, #tpu.memory_space<vmem>>, vector<1x2xf32>
    %74 = vector.broadcast %72 : vector<2x1xf32> to vector<2x2xf32>
    %75 = vector.broadcast %73 : vector<1x2xf32> to vector<2x2xf32>
    %76 = arith.mulf %74, %75 : vector<2x2xf32>
    %c0_31 = arith.constant 0 : index
    %c0_32 = arith.constant 0 : index
    %77 = vector.load %arg4[%c0_31, %c0_32] : memref<1x2xf32, #tpu.memory_space<vmem>>, vector<1x2xf32>
    %78 = vector.broadcast %77 : vector<1x2xf32> to vector<2x2xf32>
    %79 = arith.addf %76, %78 : vector<2x2xf32>
    %c0_33 = arith.constant 0 : index
    %c0_34 = arith.constant 0 : index
    %80 = vector.load %arg6[%c0_33, %c0_34] : memref<2x2xf32, #tpu.memory_space<vmem>>, vector<2x2xf32>
    tpu.vector_store %arg6[%c0_33, %c0_34], %79 {strides = array<i32>} : memref<2x2xf32, #tpu.memory_space<vmem>>, vector<2x2xf32>,
    return
  }
  func.func @transform_0(%arg0: i32) -> (i32, i32) {
    %c0_i32 = arith.constant 0 : i32
    %c0_i32_0 = arith.constant 0 : i32
    %c0_i32_1 = arith.constant 0 : i32
    return %c0_i32, %c0_i32_0 : i32, i32
  }
  func.func @transform_1(%arg0: i32) -> (i32, i32) {
    %c0_i32 = arith.constant 0 : i32
    %c0_i32_0 = arith.constant 0 : i32
    %c0_i32_1 = arith.constant 0 : i32
    return %c0_i32, %c0_i32_0 : i32, i32
  }
  func.func @transform_2(%arg0: i32) -> (i32, i32) {
    %c0_i32 = arith.constant 0 : i32
    %c0_i32_0 = arith.constant 0 : i32
    %c0_i32_1 = arith.constant 0 : i32
    return %c0_i32, %c0_i32_0 : i32, i32
  }
  func.func @transform_3(%arg0: i32) -> (i32, i32) {
    %c0_i32 = arith.constant 0 : i32
    %c0_i32_0 = arith.constant 0 : i32
    %c0_i32_1 = arith.constant 0 : i32
    return %c0_i32, %c0_i32_0 : i32, i32
  }
  func.func @transform_4(%arg0: i32) -> (i32, i32) {
    %c0_i32 = arith.constant 0 : i32
    %c0_i32_0 = arith.constant 0 : i32
    return %arg0, %c0_i32 : i32, i32
  }
  func.func @transform_5(%arg0: i32) -> (i32, i32) {
    %c0_i32 = arith.constant 0 : i32
    %c0_i32_0 = arith.constant 0 : i32
    return %arg0, %c0_i32 : i32, i32
  }
}

</mosaic_0001>

<bundles_post_ra>
// kernel: tpu_custom_call.1
= control target key start
LH: loop header
LB: loop body
LE: loop exit
PB: predicated region body
PF: predicated region fallthrough
CT: control target
= control target key end

     0   :  { %11 = vsyncpa [#allocation5], 0  ;;  %s275_s0 = inlined_call_operand.hbm [shape: f32[4,3], index: 0, kind: input, shape index: {}]   ;;  %s276_s1 = inlined_call_operand.<no memory space> [shape: f32[1,1], index: 1, kind: input, shape index: {}]   ;;  %s277_s2 = inlined_call_operand.vmem [shape: f32[1,2], index: 2, kind: input, shape index: {}]   ;;  %s278_s3 = inlined_call_operand.vmem [shape: f32[1,2], index: 3, kind: input, shape index: {}]   ;;  %s279_s4 = inlined_call_operand.vmem [shape: f32[2,512], index: 4, kind: input, shape index: {}]   ;;  %s280_s5 = inlined_call_operand.hbm [shape: f32[2,2], index: 5, kind: output, shape index: {}]  }
   0x1   :  { %12 = vsyncpa [#allocation4], 0  ;;  %s159_s20 = scalar_lea.hbm %s275_s0, 64 }
   0x2   :  { %p160_p0 = scmp.ne.s32.totalorder %s275_s0, %s159_s20  ;;  %p163_p1 = scmp.lt.u32.totalorder %s159_s20, %s275_s0 }
   0x4   :  { %p165_p2 = pnand %p163_p1, %p160_p0 }
   0x6   :  { %168 = shalt.err (!%p165_p2)
}
   0x7   :  { %s195_s25 = smov [#allocation3]  }
   0x8   :  { %20 = dma.hbm_to_smem %s275_s0, 64, %s195_s25, [#allocation5]  }
   0x9   :  { %191 = dma.done.wait [#allocation5], 64  }
   0xa   :  { %192 = vsyncadd [#allocation5], 4294967232 }
   0xb   :  { %32 = sfence }
   0xc   :  { %s33_s28 = sld [smem:[#allocation3]]  ;;  %v45_v0 = vld [vmem:[%s279_s4] sm:$0x3]  ;;  %s140_s9 = sld [smem:[#allocation3 + $0x2]]  ;;  %v52_v1 = vld [vmem:[%s279_s4 + $0x2] sm:$0x3]  ;;  %v82_v37 = vlaneseq  ;;  %v103_v49 = vstv %s276_s1 }
   0xd   :  { %s141_s29 = sld [smem:[#allocation3 + $0x80]]  ;;  %s143_s10 = sld [smem:[#allocation3 + $0x82]]  ;;  %v62_v2 = vld [vmem:[%s279_s4 + $0x4] sm:$0x3]  ;;  %v72_v5 = vld [vmem:[%s279_s4 + $0x6] sm:$0x3] }
   0xe   :  { %s144_s30 = sld [smem:[#allocation3 + $0x100]]  ;;  %s146_s13 = sld [smem:[#allocation3 + $0x102]]  ;;  %v83_v38 = vand.u32 127, %v82_v37  ;;  %v198_v39 = vmov 0.0   ;;  %vm98_vm2 = vcmask 1041408   ;;  %vm122_vm3 = vcmask 9216  }
   0xf   :  { %s147_s6 = sld [smem:[#allocation3 + $0x180]]  ;;  %s149_s14 = sld [smem:[#allocation3 + $0x182]]  ;;  %v152_v52 = vld [vmem:[%s277_s2] ss:$0 sm:$0xff] }
  0x10   :  { %s139_s16 = sld [smem:[#allocation3 + $0x1]]  ;;  %s196_s4 = smov 1   ;;  %vm84_vm0 = vcmp.gt.s32.totalorder %v83_v38, 0  ;;  %vm87_vm1 = vcmp.lt.s32.totalorder %v83_v38, 127  ;;  %v153_v54 = vld [vmem:[%s278_s3] ss:$0 sm:$0xff] }
  0x11   :  { %s142_s17 = sld [smem:[#allocation3 + $0x81]]  ;;  %s197_s22 = smov 127   ;;  %v150_v40 = vsel %vm84_vm0, 1.0, %v198_v39  ;;  %v151_v43 = vsel %vm87_vm1, 1.0, %v198_v39 }
  0x12   :  { %v46_v3 = vstv %s33_s28  ;;  %s145_s20 = sld [smem:[#allocation3 + $0x101]]  ;;  %v50_v13 = vstv %s140_s9 }
  0x13   :  { %v53_v4 = vstv %s141_s29  ;;  %s148_s21 = sld [smem:[#allocation3 + $0x181]]  ;;  %v47_v6 = vmul.f32 %v46_v3, %v45_v0  ;;  %v59_v14 = vstv %s143_s10  ;;  %v51_v15 = vmul.f32 %v50_v13, %v45_v0  ;;  %s199_s29 = smov [#allocation6]  }
  0x14   :  { %v54_v7 = vmul.f32 %v53_v4, %v52_v1  ;;  %v63_v8 = vstv %s144_s30  ;;  %v60_v16 = vmul.f32 %v59_v14, %v52_v1  ;;  %v69_v17 = vstv %s146_s13  ;;  %s130_s30 = sshll.u32 %s199_s29, 4  ;;  %s131_s30 = int_to_ptr.vmem [resolvable:$true] %s130_s30 }
  0x15   :  { %v73_v9 = vstv %s147_s6  ;;  %v64_v10 = vmul.f32 %v63_v8, %v62_v2  ;;  %v79_v18 = vstv %s149_s14  ;;  %v70_v20 = vmul.f32 %v69_v17, %v62_v2  ;;  %s169_s6 = scalar_lea.vmem %s131_s30, 32  ;;  %p174_p4 = scmp.lt.s32.totalorder %s131_s30, %s131_s30 }
  0x16   :  { %v55_v11 = vadd.f32 %v54_v7, %v47_v6  ;;  %v74_v12 = vmul.f32 %v73_v9, %v72_v5  ;;  %v80_v21 = vmul.f32 %v79_v18, %v72_v5  ;;  %v48_v22 = vstv %s139_s16  ;;  %p170_p3 = scmp.ne.s32.totalorder %s131_s30, %s169_s6  ;;  %p175_p5 = scmp.lt.s32.totalorder %s169_s6, %s169_s6 }
  0x17   :  { %v61_v23 = vadd.f32 %v60_v16, %v51_v15  ;;  %v49_v24 = vmul.f32 %v48_v22, %v45_v0  ;;  %v56_v25 = vstv %s142_s17 }
  0x18   :  { %v65_v19 = vadd.f32 %v64_v10, %v55_v11  ;;  %v66_v26 = vstv %s145_s20  ;;  %v57_v28 = vmul.f32 %v56_v25, %v52_v1  ;;  %p176_p6 = por %p175_p5, %p174_p4 }
  0x19   :  { %v67_v29 = vmul.f32 %v66_v26, %v62_v2  ;;  %v76_v30 = vstv %s148_s21  ;;  %v71_v31 = vadd.f32 %v70_v20, %v61_v23 }
  0x1a   :  { %v75_v27 = vadd.f32 %v74_v12, %v65_v19  ;;  %v58_v32 = vadd.f32 %v57_v28, %v49_v24  ;;  %v77_v33 = vmul.f32 %v76_v30, %v72_v5  ;;  %p177_p7 = pnand %p176_p6, %p170_p3 }
  0x1b   :  { %v81_v34 = vadd.f32 %v80_v21, %v71_v31 }
  0x1c   :  { %90 = vrot.lane.b32.xlu0 %v75_v27, %s196_s4  ;;  %v68_v35 = vadd.f32 %v67_v29, %v58_v32 }
  0x1e   :  { %v78_v36 = vadd.f32 %v77_v33, %v68_v35 }
  0x20   :  { %94 = vrot.lane.b32.xlu0 %v81_v34, %s197_s22 }
  0x8e   :  { %v91_v41 = vpop.permute.xlu0 %90 }
  0x8f   :  { %v92_v42 = vmul.f32 %v150_v40, %v91_v41 }
  0x91   :  { %v93_v45 = vadd.f32 %v92_v42, %v78_v36 }
  0x92   :  { %v95_v44 = vpop.permute.xlu0 %94 }
  0x93   :  { %v96_v46 = vmul.f32 %v151_v43, %v95_v44 }
  0x95   :  { %v97_v47 = vadd.f32 %v96_v46, %v93_v45 }
  0x97   :  { %v99_v48 = vsel %vm98_vm2, %v97_v47, -inf }
  0x98   :  { %100 = vmax.xlane.f32.xlu1 %v99_v48 }
 0x125   :  { %v101_v50 = vpop.xlane.xlu1 %100 }
 0x126   :  { %v104_v51 = vadd.f32 %v103_v49, %v101_v50 }
 0x128   :  { %v105_v53 = vmax.f32 %v104_v51, 0.0 }
 0x12a   :  { %v113_v55 = vmul.f32 %v152_v52, %v105_v53 }
 0x12c   :  { %v121_v56 = vadd.f32 %v153_v54, %v113_v55 }
 0x12e   :  { %123 = vst.msk [vmem:[#allocation6] sm:$0x3] %vm122_vm3, %v121_v56 }
 0x12f   :  { %180 = shalt.err (!%p177_p7)
}
 0x130   :  { %s181_s7 = scalar_lea.hbm %s280_s5, 32 }
 0x131   :  { %p182_p8 = scmp.ne.s32.totalorder %s280_s5, %s181_s7  ;;  %p185_p9 = scmp.lt.u32.totalorder %s181_s7, %s280_s5 }
 0x133   :  { %p187_p10 = pnand %p185_p9, %p182_p8 }
 0x135   :  { %190 = shalt.err (!%p187_p10)
}
 0x136   :  { %133 = dma.vmem_to_hbm [thread:$0]  %s131_s30, 32, %s280_s5, [#allocation4]  }
 0x137   :  { %193 = dma.done.wait [#allocation4], 32  }
 0x138   :  { %194 = vsyncadd [#allocation4], 4294967264 }
 0x139   :  { %137 = vsyncpa [#allocation4], 1 }
 0x13a   :  { %138 = vsyncpa [#allocation5], 1 }

</bundles_post_ra>
